<compile_context>
chip_gen: v7x
topology: tpu7x:2x2x1
jax: 0.10.0
libtpu: 0.0.40
codegen_flags: <defaults>
</compile_context>

<pallas_src>
import numpy as np
import jax
import jax.numpy as jnp
from jax.experimental import pallas as pl
from jax.experimental.pallas import tpu as pltpu


def _cparams(sem):
    return pltpu.CompilerParams(dimension_semantics=sem,
                                vmem_limit_bytes=48 * 1024 * 1024)


# -------------------- kernel 1: extract_features + BN + PReLU + shrink ------

def _make_feat_shrink_kernel(TH, W):
    M = TH * W

    def kernel(p_ref, w1_ref, s1_ref, b1_ref, a1_ref, w2_ref, b2_ref, out_ref):
        # p_ref: (1,TH,W,25) bf16 im2col patches of the 1-channel input.
        patches = p_ref[0].reshape(M, 25)
        acc = jnp.dot(patches, w1_ref[...],
                      preferred_element_type=jnp.float32)          # (M,256) f32
        y = acc * s1_ref[0] + b1_ref[0]                             # folded conv-bias+BN
        y = jnp.where(y >= 0.0, y, a1_ref[0] * y)                   # PReLU(256)
        h = jnp.dot(y.astype(jnp.bfloat16), w2_ref[...],
                    preferred_element_type=jnp.float32)             # shrink 256->32
        h = h + b2_ref[0]
        out_ref[0] = h.reshape(TH, W, 32).astype(out_ref.dtype)

    return kernel


def conv_feat_shrink(x1, w1r, s1, b1, a1, w2, b2, *, row_block):
    """x1: (N,H,W) f32 single-channel input. Returns (N,H,W,32) bf16."""
    N, H, W = x1.shape
    xp = jnp.pad(x1, ((0, 0), (2, 2), (2, 2)))
    # im2col of the 5x5 window: cheap for a 1-channel input, turns the first
    # layer into a single MXU matmul (K=25) instead of VPU outer-products.
    cols = [xp[:, kh:kh + H, kw:kw + W] for kh in range(5) for kw in range(5)]
    patches = jnp.stack(cols, axis=-1).astype(jnp.bfloat16)         # (N,H,W,25)

    TH = row_block
    R = H // TH
    kernel = _make_feat_shrink_kernel(TH, W)
    return pl.pallas_call(
        kernel,
        out_shape=jax.ShapeDtypeStruct((N, H, W, 32), jnp.bfloat16),
        grid=(N, R),
        in_specs=[
            pl.BlockSpec((1, TH, W, 25), lambda n, r: (n, r, 0, 0)),
            pl.BlockSpec((25, 256), lambda n, r: (0, 0)),
            pl.BlockSpec((1, 256), lambda n, r: (0, 0)),
            pl.BlockSpec((1, 256), lambda n, r: (0, 0)),
            pl.BlockSpec((1, 256), lambda n, r: (0, 0)),
            pl.BlockSpec((256, 32), lambda n, r: (0, 0)),
            pl.BlockSpec((1, 32), lambda n, r: (0, 0)),
        ],
        out_specs=pl.BlockSpec((1, TH, W, 32), lambda n, r: (n, r, 0, 0)),
        compiler_params=_cparams(("parallel", "parallel")),
    )(patches, w1r, s1.reshape(1, 256), b1.reshape(1, 256),
      a1.reshape(1, 256), w2, b2.reshape(1, 32))


# -------------------- kernel 2: map block (3x3 conv + BN + PReLU [+ skip]) --

def _make_map_kernel(H, W, has_skip):
    M = H * W

    def kernel(*refs):
        if has_skip:
            x_ref, w_ref, s_ref, b_ref, a_ref, skip_ref, out_ref = refs
        else:
            x_ref, w_ref, s_ref, b_ref, a_ref, out_ref = refs
        acc = jnp.zeros((M, 32), jnp.float32)
        for kh in range(3):
            for kw in range(3):
                patch = x_ref[0, kh:kh + H, kw:kw + W, :].reshape(M, 32)
                acc = acc + jnp.dot(patch, w_ref[kh, kw],
                                    preferred_element_type=jnp.float32)
        y = acc * s_ref[0] + b_ref[0]
        y = jnp.where(y >= 0.0, y, a_ref[0] * y)
        if has_skip:
            y = y + skip_ref[0].reshape(M, 32).astype(jnp.float32)
        out_ref[0] = y.reshape(H, W, 32).astype(out_ref.dtype)

    return kernel


def conv_map(h, w, scale, bias, alpha, skip=None):
    """h: (N,H,W,32) bf16. w: (3,3,32,32) bf16. Returns (N,H,W,32) bf16."""
    N, H, W, _ = h.shape
    hp = jnp.pad(h, ((0, 0), (1, 1), (1, 1), (0, 0)))
    kernel = _make_map_kernel(H, W, skip is not None)
    in_specs = [
        pl.BlockSpec((1, H + 2, W + 2, 32), lambda n: (n, 0, 0, 0)),
        pl.BlockSpec((3, 3, 32, 32), lambda n: (0, 0, 0, 0)),
        pl.BlockSpec((1, 32), lambda n: (0, 0)),
        pl.BlockSpec((1, 32), lambda n: (0, 0)),
        pl.BlockSpec((1, 32), lambda n: (0, 0)),
    ]
    args = [hp, w, scale.reshape(1, 32), bias.reshape(1, 32), alpha.reshape(1, 32)]
    if skip is not None:
        in_specs.append(pl.BlockSpec((1, H, W, 32), lambda n: (n, 0, 0, 0)))
        args.append(skip)
    return pl.pallas_call(
        kernel,
        out_shape=jax.ShapeDtypeStruct((N, H, W, 32), jnp.bfloat16),
        grid=(N,),
        in_specs=in_specs,
        out_specs=pl.BlockSpec((1, H, W, 32), lambda n: (n, 0, 0, 0)),
        compiler_params=_cparams(("parallel",)),
    )(*args)


# ------- kernel 3: fused expand(32->256) + phase-decomposed ConvTranspose ---

def _make_upscale_kernel(H, W, Cin, Cout):
    M = H * W

    def kernel(x_ref, w_ref, b_ref, res_ref, out_ref):
        acc = jnp.zeros((M, Cout), jnp.float32)
        for dh in range(3):
            for dw in range(3):
                patch = x_ref[0, dh:dh + H, dw:dw + W, :].reshape(M, Cin)
                acc = acc + jnp.dot(patch, w_ref[dh, dw],
                                    preferred_element_type=jnp.float32)
        y = acc + b_ref[0]
        y = y.reshape(H, W, Cout) + res_ref[0]        # fused bilinear residual
        out_ref[0] = y

    return kernel


def upscale_fused(h32, wc, bias48, res48):
    """h32: (N,H,W,32) bf16. wc: (3,3,33,48) bf16. res48: (N,H,W,48) f32.
    Returns (N,H,W,48) f32 (16 sub-pixel phases x 3 RGB)."""
    N, H, W, _ = h32.shape
    ones = jnp.ones((N, H, W, 1), h32.dtype)          # 33rd channel carries the
    a = jnp.concatenate([h32, ones], axis=-1)         # expand-bias exactly
    ap = jnp.pad(a, ((0, 0), (1, 1), (1, 1), (0, 0)))  # (N,H+2,W+2,33)
    kernel = _make_upscale_kernel(H, W, 33, 48)
    return pl.pallas_call(
        kernel,
        out_shape=jax.ShapeDtypeStruct((N, H, W, 48), jnp.float32),
        grid=(N,),
        in_specs=[
            pl.BlockSpec((1, H + 2, W + 2, 33), lambda n: (n, 0, 0, 0)),
            pl.BlockSpec((3, 3, 33, 48), lambda n: (0, 0, 0, 0)),
            pl.BlockSpec((1, 48), lambda n: (0, 0)),
            pl.BlockSpec((1, H, W, 48), lambda n: (n, 0, 0, 0)),
        ],
        out_specs=pl.BlockSpec((1, H, W, 48), lambda n: (n, 0, 0, 0)),
        compiler_params=_cparams(("parallel",)),
    )(ap, wc, bias48.reshape(1, 48), res48)


# ----------------------- bilinear x4 (separable matmul) ---------------------

def _bilinear_kernel(x_ref, mh_ref, mwt_ref, out_ref):
    t = jnp.dot(mh_ref[...], x_ref[0], preferred_element_type=jnp.float32)
    out_ref[0] = jnp.dot(t, mwt_ref[...], preferred_element_type=jnp.float32)


def bilinear_x4_pallas(x, mh, mwt):
    """x: (N,H,W). mh: (4H,H). mwt: (W,4W). Returns (N,4H,4W) f32."""
    N, H, W = x.shape
    OH, OW = mh.shape[0], mwt.shape[1]
    return pl.pallas_call(
        _bilinear_kernel,
        out_shape=jax.ShapeDtypeStruct((N, OH, OW), jnp.float32),
        grid=(N,),
        in_specs=[pl.BlockSpec((1, H, W), lambda n: (n, 0, 0)),
                  pl.BlockSpec((OH, H), lambda n: (0, 0)),
                  pl.BlockSpec((W, OW), lambda n: (0, 0))],
        out_specs=pl.BlockSpec((1, OH, OW), lambda n: (n, 0, 0)),
        compiler_params=_cparams(("parallel",)),
    )(x, mh, mwt)


def _bilinear_matrix(in_size, scale_factor=4):
    """PyTorch interpolate(mode='bilinear', align_corners=False) as a matrix."""
    out_size = in_size * scale_factor
    scale = 1.0 / scale_factor
    o = np.arange(out_size, dtype=np.float64)
    src = scale * (o + 0.5) - 0.5
    src = np.where(src < 0.0, 0.0, src)
    i0 = np.minimum(np.floor(src).astype(np.int64), in_size - 1)
    i1 = np.minimum(i0 + 1, in_size - 1)
    lam = src - i0
    M = np.zeros((out_size, in_size), dtype=np.float32)
    oi = o.astype(np.int64)
    np.add.at(M, (oi, i0), 1.0 - lam)
    np.add.at(M, (oi, i1), lam)
    return M


# -------------------------- weight preprocessing -----------------------------

def _fold_bn(conv_bias, gamma, beta, mean, var, eps=1e-5):
    scale = gamma / jnp.sqrt(var + eps)
    bias = beta + scale * (conv_bias - mean)
    return scale, bias


def _build_upscale_weights(wt, we_hwio, be, bt):
    """Combine expand (1x1, 32->256, bias be) with the phase-decomposed
    ConvTranspose2d(256,3,9,s=4,p=4,op=3) weight wt (torch layout 256,3,9,9).

    Returns wc (3,3,33,48) bf16 and bias48 (48,) f32.  Output channel ordering:
    c48 = (p*4+q)*3 + rgb, where (p,q) is the sub-pixel phase (row,col)."""
    wt_hwio = jnp.transpose(wt, (2, 3, 0, 1))                   # (9,9,256,3)
    wt_pad = jnp.pad(wt_hwio, ((0, 1), (0, 1), (0, 0), (0, 0)))  # zero tap at idx 9
    # tap dh in {0,1,2} of the low-res 3x3 conv reads input row m+dh-1 and
    # corresponds to transposed-conv tap kh = p + 4*(2-dh) (invalid -> zero).
    idx = np.array([[min(p + 4 * (2 - d), 9) for d in range(3)] for p in range(4)])
    w_eff = wt_pad[idx[:, :, None, None], idx[None, None, :, :]]  # (p,dh,q,dw,256,3)
    w_eff = jnp.transpose(w_eff, (1, 3, 4, 0, 2, 5)).reshape(3, 3, 256, 48)
    # Fold the 1x1 expand: augmented input channel 33 is a constant 1 inside the
    # valid region (0 in the padding ring), so e_pad = a_pad @ wec reproduces the
    # zero-padded expand output (incl. bias be) exactly.
    wec = jnp.concatenate([we_hwio[0, 0], be[None, :]], axis=0)   # (33,256)
    wc = jnp.einsum('ke,xyef->xykf', wec, w_eff)                  # (3,3,33,48)
    bias48 = jnp.tile(bt, 16).astype(jnp.float32)                 # (48,)
    return wc.astype(jnp.bfloat16), bias48


def _pick_row_block(H):
    for cand in (128, 64, 32, 16, 8, 4, 2, 1):
        if cand <= H and H % cand == 0:
            return cand
    return H


# ------------------------------ parameters ----------------------------------

def init_params(key):
    ks = iter(jax.random.split(key, 64))

    def rnd(shape, s=0.05):
        return jax.random.normal(next(ks), shape, jnp.float32) * s

    p = {}
    # extract_features: Conv2d(1,256,5,1,2) + BN(256) + PReLU(256)
    p["w1"], p["b1"] = rnd((5, 5, 1, 256)), rnd((256,))
    p["bn1_gamma"] = 1.0 + rnd((256,))
    p["bn1_beta"] = rnd((256,))
    p["bn1_mean"] = rnd((256,))
    p["bn1_var"] = 1.0 + 0.1 * jax.random.uniform(next(ks), (256,))
    p["a1"] = 0.25 * jnp.ones((256,), jnp.float32)
    # shrink: Conv2d(256,32,1)
    p["w2"], p["b2"] = rnd((1, 1, 256, 32)), rnd((32,))
    # map: 4 x [Conv2d(32,32,3,1,1) + BN(32) + PReLU(32)]
    for i in range(4):
        p[f"wm{i}"], p[f"bm{i}"] = rnd((3, 3, 32, 32)), rnd((32,))
        p[f"bnm{i}_gamma"] = 1.0 + rnd((32,))
        p[f"bnm{i}_beta"] = rnd((32,))
        p[f"bnm{i}_mean"] = rnd((32,))
        p[f"bnm{i}_var"] = 1.0 + 0.1 * jax.random.uniform(next(ks), (32,))
        p[f"am{i}"] = 0.25 * jnp.ones((32,), jnp.float32)
    # expanding: Conv2d(32,256,1)
    p["we"], p["be"] = rnd((1, 1, 32, 256)), rnd((256,))
    # upscale: ConvTranspose2d(256,3,9,4,4,output_padding=3); torch weight (256,3,9,9)
    p["wt"], p["bt"] = rnd((256, 3, 9, 9)), rnd((3,))
    return p


# ------------------------------- forward ------------------------------------

def fsrcnn_forward(x_nchw, p, mh, mwt):
    x_nchw = x_nchw.astype(jnp.float32)
    N, _, H, W = x_nchw.shape
    x1 = x_nchw[:, 0]                                            # (N,H,W)

    # residual: bilinear x4 of the input, rearranged into the 16-phase layout
    res = bilinear_x4_pallas(x1, mh, mwt)                        # (N,4H,4W)
    res16 = res.reshape(N, H, 4, W, 4).transpose(0, 1, 3, 2, 4).reshape(N, H, W, 16)
    res48 = jnp.repeat(res16, 3, axis=-1)                        # (N,H,W,48)

    # extract_features + BN + PReLU fused with shrink (256-ch tensor stays on-chip)
    s1, b1 = _fold_bn(p["b1"], p["bn1_gamma"], p["bn1_beta"],
                      p["bn1_mean"], p["bn1_var"])
    w1r = p["w1"].reshape(25, 256).astype(jnp.bfloat16)
    w2 = p["w2"][0, 0].astype(jnp.bfloat16)                      # (256,32)
    h = conv_feat_shrink(x1, w1r, s1, b1, p["a1"], w2, p["b2"],
                         row_block=_pick_row_block(H))
    skip = h

    # map stack (skip-add fused into the last block)
    for i in range(4):
        si, bi = _fold_bn(p[f"bm{i}"], p[f"bnm{i}_gamma"], p[f"bnm{i}_beta"],
                          p[f"bnm{i}_mean"], p[f"bnm{i}_var"])
        h = conv_map(h, p[f"wm{i}"].astype(jnp.bfloat16), si, bi, p[f"am{i}"],
                     skip=skip if i == 3 else None)

    # fused expanding + phase-decomposed ConvTranspose + residual add
    wc, bias48 = _build_upscale_weights(p["wt"], p["we"], p["be"], p["bt"])
    y48 = upscale_fused(h, wc, bias48, res48)                    # (N,H,W,48)

    # depth-to-space: (N,H,W,16 phases x 3) -> (N,3,4H,4W)
    out = (y48.reshape(N, H, W, 4, 4, 3)
              .transpose(0, 5, 1, 3, 2, 4)
              .reshape(N, 3, 4 * H, 4 * W))
    return out


# --------------------------------- main --------------------------------------

if __name__ == "__main__":
    key = jax.random.PRNGKey(0)
    kx, kp = jax.random.split(key)
    N, C, H, W = 2, 1, 16, 16
    x = jax.random.normal(kx, (N, C, H, W), jnp.float32)
    params = init_params(kp)

    mh = jnp.asarray(_bilinear_matrix(H, 4))       # (64,16)
    mwt = jnp.asarray(_bilinear_matrix(W, 4)).T    # (16,64)

    out = fsrcnn_forward(x, params, mh, mwt)
    out = jax.block_until_ready(out)
    assert out.shape == (N, 3, 4 * H, 4 * W), out.shape
    assert bool(jnp.all(jnp.isfinite(out)))
    print("KERNEL_OK")
</pallas_src>

<mosaic_0001>
module attributes {stable_mosaic.version = 11 : i64} {
  func.func @_bilinear_kernel(%arg0: i32, %arg1: memref<1x16x16xf32, #tpu.memory_space<vmem>>, %arg2: memref<64x16xf32, #tpu.memory_space<vmem>>, %arg3: memref<16x64xf32, #tpu.memory_space<vmem>>, %arg4: memref<1x64x64xf32, #tpu.memory_space<vmem>>) attributes {dimension_semantics = [#tpu.dimension_semantics<parallel>], iteration_bounds = array<i64: 2>, scalar_prefetch = 0 : i64, scratch_operands = 0 : i64, tpu.core_type = #tpu.core_type<tc>, window_params = [{transform_indices = @transform_0, window_bounds = array<i64: 1, 16, 16>}, {pipeline_mode = #tpu.pipeline_mode<synchronous>, transform_indices = @transform_1, window_bounds = array<i64: 64, 16>}, {pipeline_mode = #tpu.pipeline_mode<synchronous>, transform_indices = @transform_2, window_bounds = array<i64: 16, 64>}, {transform_indices = @transform_3, window_bounds = array<i64: 1, 64, 64>}]} {
    %c0 = arith.constant 0 : index
    %c0_0 = arith.constant 0 : index
    %0 = vector.load %arg2[%c0, %c0_0] : memref<64x16xf32, #tpu.memory_space<vmem>>, vector<64x16xf32>
    %c0_1 = arith.constant 0 : index
    %c0_2 = arith.constant 0 : index
    %c0_3 = arith.constant 0 : index
    %1 = vector.load %arg1[%c0_1, %c0_2, %c0_3] : memref<1x16x16xf32, #tpu.memory_space<vmem>>, vector<1x16x16xf32>
    %2 = vector.shape_cast %1 : vector<1x16x16xf32> to vector<16x16xf32>
    %cst = arith.constant dense<0.000000e+00> : vector<64x16xf32>
    %3 = tpu.matmul %0, %2, %cst {dimension_numbers = #tpu.dot_dimension_numbers<[1], [0], [0], [1], [0, 0, 1, 1], [], []>} : vector<64x16xf32>, vector<16x16xf32>, vector<64x16xf32> -> vector<64x16xf32>
    %c0_4 = arith.constant 0 : index
    %c0_5 = arith.constant 0 : index
    %4 = vector.load %arg3[%c0_4, %c0_5] : memref<16x64xf32, #tpu.memory_space<vmem>>, vector<16x64xf32>
    %cst_6 = arith.constant dense<0.000000e+00> : vector<64x64xf32>
    %5 = tpu.matmul %3, %4, %cst_6 {dimension_numbers = #tpu.dot_dimension_numbers<[1], [0], [0], [1], [0, 0, 1, 1], [], []>} : vector<64x16xf32>, vector<16x64xf32>, vector<64x64xf32> -> vector<64x64xf32>
    %c0_7 = arith.constant 0 : index
    %c0_8 = arith.constant 0 : index
    %c0_9 = arith.constant 0 : index
    %6 = vector.load %arg4[%c0_7, %c0_8, %c0_9] : memref<1x64x64xf32, #tpu.memory_space<vmem>>, vector<1x64x64xf32>
    %7 = vector.shape_cast %6 : vector<1x64x64xf32> to vector<64x64xf32>
    %8 = vector.shape_cast %5 : vector<64x64xf32> to vector<1x64x64xf32>
    tpu.vector_store %arg4[%c0_7, %c0_8, %c0_9], %8 {strides = array<i32>} : memref<1x64x64xf32, #tpu.memory_space<vmem>>, vector<1x64x64xf32>,
    return
  }
  func.func @transform_0(%arg0: i32) -> (i32, i32, i32) {
    %c0_i32 = arith.constant 0 : i32
    %c0_i32_0 = arith.constant 0 : i32
    %c0_i32_1 = arith.constant 0 : i32
    return %arg0, %c0_i32, %c0_i32_0 : i32, i32, i32
  }
  func.func @transform_1(%arg0: i32) -> (i32, i32) {
    %c0_i32 = arith.constant 0 : i32
    %c0_i32_0 = arith.constant 0 : i32
    %c0_i32_1 = arith.constant 0 : i32
    return %c0_i32, %c0_i32_0 : i32, i32
  }
  func.func @transform_2(%arg0: i32) -> (i32, i32) {
    %c0_i32 = arith.constant 0 : i32
    %c0_i32_0 = arith.constant 0 : i32
    %c0_i32_1 = arith.constant 0 : i32
    return %c0_i32, %c0_i32_0 : i32, i32
  }
  func.func @transform_3(%arg0: i32) -> (i32, i32, i32) {
    %c0_i32 = arith.constant 0 : i32
    %c0_i32_0 = arith.constant 0 : i32
    %c0_i32_1 = arith.constant 0 : i32
    return %arg0, %c0_i32, %c0_i32_0 : i32, i32, i32
  }
}

</mosaic_0001>

<bundles_post_ra>
// kernel: tpu_custom_call.1
= control target key start
LH: loop header
LB: loop body
LE: loop exit
PB: predicated region body
PF: predicated region fallthrough
CT: control target
= control target key end

     0   :  { %8 = vsyncpa [#allocation3], 0  ;;  %s900_s0 = inlined_call_operand.vmem [shape: f32[2,16,16], index: 0, kind: input, shape index: {}]   ;;  %s901_s1 = inlined_call_operand.vmem [shape: f32[64,16], index: 1, kind: input, shape index: {}]   ;;  %s902_s2 = inlined_call_operand.vmem [shape: f32[16,64], index: 2, kind: input, shape index: {}]   ;;  %s903_s3 = inlined_call_operand.hbm [shape: f32[2,64,64], index: 3, kind: output, shape index: {}]  }
   0x1   :  { %10 = vsyncpa [#allocation3 + $0x1], 0  ;;  %s743_s12 = smov 0   ;;  %s745_s13 = smov 0  }
   0x2   :  { %s747_s14 = smov 0   ;;  %s749_s15 = smov 0  }
   0x3 LB: > { %s764_s16 = sadd.s32 4294967295, %s718_s15   ;;  %s525_s17 = sadd.s32 4294967294, %s718_s15   ;;  %s718_s15 = sphi %s749_s15, %s909_s15   ;;  %s714_s14 = sphi %s747_s14, %s908_s14   ;;  %s710_s13 = sphi %s745_s13, %s907_s13   ;;  %s706_s12 = sphi %s743_s12, %s906_s12  }
   0x4   : > { %s768_s18 = sadd.s32 1, %s718_s15   ;;  %s91_s19 = sadd.s32 1, %s714_s14 }
   0x5   : > { %s88_s20 = ssub.s32 %s718_s15, %s768_s18  ;;  %p101_p0 = scmp.ne.s32.totalorder %s714_s14, %s710_s13 }
   0x6   : > { %p89_p1 = scmp.eq.s32.totalorder %s88_s20, 0  ;;  %p102_p2 = scmp.eq.s32.totalorder %s764_s16, 1 }
   0x7   : > { %p107_p3 = scmp.ne.s32.totalorder %s710_s13, %s706_s12  ;;  %p108_p4 = scmp.eq.s32.totalorder %s525_s17, 1 }
   0x8   : > { %s779_s21 = scalar_select %p89_p1, %s714_s14, %s91_s19  }
   0x9   : > { %p781_p5 = por %p102_p2, %p101_p0  ;;  %p785_p6 = por %p108_p4, %p107_p3 }
   0xa   : > { %p528_p7 = scmp.ge.s32.totalorder %s718_s15, 1  ;;  %p140_p8 = scmp.lt.s32.totalorder %s718_s15, 3 }
   0xc   : > { %p141_p9 = pnand %p528_p7, %p140_p8 }
   0xd   : > { %p164_p10 = scmp.lt.s32.totalorder (!%p141_p9), %s764_s16, 1  ;;  %v169_v0 = vld [vmem:[%s901_s1] sm:$0xff] (!%p141_p9)  ;;  %vm179_vm0 = vcmask (!%p141_p9), 130048   ;;  %v310_v2 = vld [vmem:[%s902_s2 + $0x8] sm:$0xff] (!%p141_p9)  ;;  %v171_v8 = vld [vmem:[%s901_s1 + $0x10] sm:$0xff] (!%p141_p9)  ;;  %vm440_vm1 = vcmask (!%p141_p9), 523264  }
   0xe   : > { %144 = sbr.rel (%p141_p9) target bundleno = 486 (0x1e6), region = 32  ;;  %579 = vmatprep.mubr.msk.f32.mxu0 (!%p141_p9), %vm179_vm0, %v169_v0  ;;  %v309_v1 = vld [vmem:[%s902_s2] sm:$0xff] (!%p141_p9)  ;;  %v170_v7 = vld [vmem:[%s901_s1 + $0x8] sm:$0xff] (!%p141_p9)  ;;  %v172_v9 = vld [vmem:[%s901_s1 + $0x18] sm:$0xff] (!%p141_p9)  ;;  %s720_s19 = smov (!%p141_p9), [#allocation2]  }
   0xf   : > { %v611_v3 = vpack.c.bf16 (!%p141_p9), %v310_v2, %v309_v1  ;;  %v173_v10 = vld [vmem:[%s901_s1 + $0x20] sm:$0xff] (!%p141_p9)  ;;  %v174_v11 = vld [vmem:[%s901_s1 + $0x28] sm:$0xff] (!%p141_p9)  ;;  %v175_v12 = vld [vmem:[%s901_s1 + $0x30] sm:$0xff] (!%p141_p9)  ;;  %s660_s20 = sshll.u32 (!%p141_p9), %s720_s19, 4  ;;  %s661_s20 = int_to_ptr.vmem [resolvable:$false] %s660_s20 }
  0x10   : > { %v176_v13 = vld [vmem:[%s901_s1 + $0x38] sm:$0xff] (!%p141_p9)  ;;  %s662_s24 = scalar_lea.vmem (!%p141_p9), %s661_s20, 2048 }
  0x11   : > { %612 = vmatprep.subr.bf16.mxu1 (!%p141_p9), %v611_v3 }
  0x12   : > { %614 = vmatpush3.bf16.msra.mxu1 (!%p141_p9), %v611_v3 }
  0x15   : > { %s165_s26 = scalar_select %p164_p10, %s764_s16, 1 }
  0x17   : > { %s553_s4 = sshll.u32 %s165_s26, 4 }
  0x18   : > { %s168_s7 = scalar_lea.vmem %s900_s0, %s553_s4  ;;  %s161_s4 = sand.u32 1, %s710_s13  }
  0x19   : > { %v177_v4 = vld [vmem:[%s168_s7] sm:$0xff]  ;;  %v178_v5 = vld [vmem:[%s168_s7 + $0x8] sm:$0xff]  ;;  %s529_s5 = sshll.u32 %s161_s4, 6  ;;  %s554_s7 = sshll.u32 %s764_s16, 10 }
  0x1a   : > { %v607_v6 = vpack.c.bf16 %v178_v5, %v177_v4  ;;  %s163_s6 = scalar_lea.vmem [#allocation2], %s529_s5  ;;  %s853_s11 = scalar_lea.hbm %s903_s3, %s554_s7 }
  0x1b   : > { %s463_s8 = sshll.u32 %s163_s6, 4  ;;  %s859_s16 = scalar_lea.sflag [#allocation3], %s161_s4  ;;  %s855_s8 = int_to_ptr.vmem [resolvable:$true] %s463_s8 }
  0x1c   : > { %608 = vmatprep.subr.bf16.mxu0 %v607_v6  ;;  %s656_s17 = scalar_lea.vmem %s855_s8, 1024  ;;  %p663_p0 = scmp.lt.s32.totalorder %s855_s8, %s661_s20 }
  0x1d   : > { %610 = vmatpush3.bf16.msra.mxu0 %v607_v6  ;;  %p657_p11 = scmp.ne.s32.totalorder %s855_s8, %s656_s17  ;;  %p664_p1 = scmp.lt.s32.totalorder %s662_s24, %s656_s17 }
  0x1f   : > { %p658_p12 = pnand %p657_p11, %p781_p5  ;;  %p665_p2 = por %p664_p1, %p663_p0 }
  0x20   : > { %580 = vmatmul.mubr.msk.f32.vlgmr.msra.gmra.mrb[0].mxu0 %vm179_vm0, %v170_v7 }
  0x21   : > { %582 = vmatprep.mubr.msk.f32.mxu0 %vm179_vm0, %v171_v8  ;;  %p659_p13 = pneg %p658_p12 }
  0x23   : > { %p666_p3 = pnand %p665_p2, %p659_p13 }
  0x24   : > { %583 = vmatmul.mubr.msk.f32.gmra.mrb[2].mxu0 %vm179_vm0, %v172_v9 }
  0x25   : > { %585 = vmatprep.mubr.msk.f32.mxu0 %vm179_vm0, %v173_v10 }
  0x28   : > { %586 = vmatmul.mubr.msk.f32.gmra.mrb[4].mxu0 %vm179_vm0, %v174_v11 }
  0x29   : > { %588 = vmatprep.mubr.msk.f32.mxu0 %vm179_vm0, %v175_v12 }
  0x2c   : > { %589 = vmatmul.mubr.msk.f32.gmra.mrb[6].mxu0 %vm179_vm0, %v176_v13 }
  0xf3   : > { %v581_v14 = vpop.f32.mrb[0].mxu0 }
  0xf4   : > { %v270_v15 = vpop.f32.mrb[1].mxu0 }
  0xf5   : > { %595 = vmatprep.mubr.msk.f32.mxu1 %vm179_vm0, %v270_v15 }
  0xf6   : > { %596 = vmatmul.mubr.msk.f32.vlgmr.msra.gmra.mrb[0].mxu1 %vm179_vm0, %v581_v14 }
  0xf7   : > { %v584_v16 = vpop.f32.mrb[2].mxu0 }
  0xf8   : > { %v280_v17 = vpop.f32.mrb[3].mxu0 }
  0xf9   : > { %598 = vmatprep.mubr.msk.f32.mxu1 %vm179_vm0, %v280_v17 }
  0xfa   : > { %599 = vmatmul.mubr.msk.f32.gmra.mrb[2].mxu1 %vm179_vm0, %v584_v16 }
  0xfb   : > { %v587_v18 = vpop.f32.mrb[4].mxu0 }
  0xfc   : > { %v290_v19 = vpop.f32.mrb[5].mxu0 }
  0xfd   : > { %601 = vmatprep.mubr.msk.f32.mxu1 %vm179_vm0, %v290_v19 }
  0xfe   : > { %602 = vmatmul.mubr.msk.f32.gmra.mrb[4].mxu1 %vm179_vm0, %v587_v18 }
  0xff   : > { %v590_v20 = vpop.f32.mrb[6].mxu0 }
 0x100   : > { %v300_v21 = vpop.f32.mrb[7].mxu0 }
 0x101   : > { %604 = vmatprep.mubr.msk.f32.mxu1 %vm179_vm0, %v300_v21 }
 0x102   : > { %605 = vmatmul.mubr.msk.f32.gmra.mrb[6].mxu1 %vm179_vm0, %v590_v20 }
 0x1c9   : > { %v597_v22 = vpop.f32.mrb[0].mxu1 }
 0x1ca   : > { %442 = vst.msk [vmem:[%s163_s6 + $0x8] sm:$0xff] %vm440_vm1, %v597_v22  ;;  %v401_v23 = vpop.f32.mrb[1].mxu1 }
 0x1cb   : > { %441 = vst.msk [vmem:[%s163_s6] sm:$0xff] %vm440_vm1, %v401_v23 }
 0x1cd   : > { %v600_v24 = vpop.f32.mrb[2].mxu1 }
 0x1ce   : > { %444 = vst.msk [vmem:[%s163_s6 + $0x18] sm:$0xff] %vm440_vm1, %v600_v24  ;;  %v411_v25 = vpop.f32.mrb[3].mxu1 }
 0x1cf   : > { %443 = vst.msk [vmem:[%s163_s6 + $0x10] sm:$0xff] %vm440_vm1, %v411_v25 }
 0x1d1   : > { %v603_v26 = vpop.f32.mrb[4].mxu1 }
 0x1d2   : > { %446 = vst.msk [vmem:[%s163_s6 + $0x28] sm:$0xff] %vm440_vm1, %v603_v26  ;;  %v421_v27 = vpop.f32.mrb[5].mxu1 }
 0x1d3   : > { %445 = vst.msk [vmem:[%s163_s6 + $0x20] sm:$0xff] %vm440_vm1, %v421_v27 }
 0x1d5   : > { %v606_v28 = vpop.f32.mrb[6].mxu1 }
 0x1d6   : > { %448 = vst.msk [vmem:[%s163_s6 + $0x38] sm:$0xff] %vm440_vm1, %v606_v28  ;;  %v431_v29 = vpop.f32.mrb[7].mxu1 }
 0x1d7   : > { %447 = vst.msk [vmem:[%s163_s6 + $0x30] sm:$0xff] %vm440_vm1, %v431_v29 }
 0x1d8   : > { %669 = shalt.err (!%p666_p3)
}
 0x1d9   : > { %s670_s25 = scalar_lea.hbm %s853_s11, 1024  ;;  %s674_s28 = scalar_lea.hbm %s903_s3, 2048 }
 0x1da   : > { %p671_p4 = scmp.ne.s32.totalorder %s853_s11, %s670_s25  ;;  %p675_p9 = scmp.lt.u32.totalorder %s853_s11, %s903_s3 }
 0x1db   : > { %p676_p10 = scmp.lt.u32.totalorder %s674_s28, %s670_s25  ;;  %p678_p12 = scmp.lt.u32.totalorder %s670_s25, %s853_s11 }
 0x1dc   : > { %p672_p7 = pnand %p671_p4, %p781_p5 }
 0x1dd   : > { %p677_p11 = por %p676_p10, %p675_p9 }
 0x1de   : > { %p673_p8 = pneg %p672_p7 }
 0x1df   : > { %p679_p13 = por %p678_p12, %p677_p11 }
 0x1e1   : > { %p680_p0 = pnand %p679_p13, %p673_p8 }
 0x1e3   : > { %683 = shalt.err (!%p680_p0)
}
 0x1e4   : > { %s721_s4 = smov 128   ;;  %s722_s5 = smov 8  }
 0x1e5   : > { %615 = dma.vmem_to_hbm [thread:$0]  (%p781_p5), %s855_s8, 1024, %s853_s11, %s859_s16, %s721_s4, %s721_s4, %s722_s5  }
 0x1e6 PF: > { %p621_p1 = scmp.ge.s32.totalorder %s718_s15, 2  ;;  %s478_s6 = sand.u32 1, %s706_s12  }
 0x1e7   : > { %s479_s7 = scalar_lea.sflag [#allocation3], %s478_s6 }
 0x1e8   : > { %p618_p2 = pnand %p621_p1, %p785_p6 }
 0x1ea   : > { %701 = dma.done.wait (!%p618_p2), %s479_s7, 1024  }
 0x1eb   : > { %703 = vsyncadd (!%p618_p2), %s479_s7, 4294966272  ;;  %p13_p3 = scmp.ge.s32.totalorder %s768_s18, 4   ;;  %s906_s12 = smov %s710_s13 }
 0x1ec   : > { %s907_s13 = smov %s714_s14  ;;  %s908_s14 = smov %s779_s21 }
 0x1ed   : > { %s909_s15 = smov %s768_s18  ;;  %15 = sbr.rel (!%p13_p3) target bundleno = 3 (0x3), region = 67 }
 0x1f4   :  { %484 = vsyncpa [#allocation3], 1 }
 0x1f5   :  { %486 = vsyncpa [#allocation3 + $0x1], 1 }

</bundles_post_ra>
